<compile_context>
chip_gen: v7x
topology: tpu7x:2x2x1
jax: 0.10.0
libtpu: 0.0.40
codegen_flags: <defaults>
</compile_context>

<pallas_src>
import jax
import jax.numpy as jnp
from jax.experimental import pallas as pl
from jax.experimental.pallas import tpu as pltpu


def _round_up(n, m):
    return ((n + m - 1) // m) * m


def _leaky_relu(v, negative_slope=0.2):
    return jnp.where(v >= 0, v, negative_slope * v)


def _disc_mlp_kernel(x_ref, lab_ref,
                     w1x_ref, ctab_ref,
                     w2_ref, b2_ref,
                     w3_ref, b3_ref,
                     w4_ref, b4_ref,
                     out_ref):
    """Fused MLP tile: 3x (Linear -> LeakyReLU(0.2)) -> Linear(1) -> Sigmoid.

    Output is written lane-dense as a (1, 1, tile_b) row block.
    """
    tb = x_ref.shape[0]
    class_pad = ctab_ref.shape[0]

    x = x_ref[...]                                   # (TB, d_in) f32
    lab = lab_ref[...]                               # (TB, 1)    int32

    # One-hot built on the VPU (no HBM traffic beyond the int32 labels);
    # replaces the embedding gather + concat of the reference module.
    class_iota = jax.lax.broadcasted_iota(jnp.int32, (tb, class_pad), 1)
    onehot = (lab == class_iota).astype(jnp.bfloat16)     # (TB, CLASS_PAD)

    # Layer 1: x @ W1_x  +  onehot @ (emb @ W1_c + b1)   (concat + bias fused).
    h = (jnp.dot(x.astype(jnp.bfloat16), w1x_ref[...],
                 preferred_element_type=jnp.float32)
         + jnp.dot(onehot, ctab_ref[...],
                   preferred_element_type=jnp.float32))
    h = _leaky_relu(h)

    # Layer 2
    h = jnp.dot(h.astype(jnp.bfloat16), w2_ref[...],
                preferred_element_type=jnp.float32) + b2_ref[...]
    h = _leaky_relu(h)

    # Layer 3
    h = jnp.dot(h.astype(jnp.bfloat16), w3_ref[...],
                preferred_element_type=jnp.float32) + b3_ref[...]
    h = _leaky_relu(h)

    # Final N=1 layer, produced directly in lane-dense (1, TB) layout:
    # contract H3 between w4 (1, H3) and h (TB, H3) on the MXU.
    logits = jnp.einsum('oh,bh->ob', w4_ref[...], h.astype(jnp.bfloat16),
                        preferred_element_type=jnp.float32)   # (1, TB)
    logits = logits + b4_ref[...]                              # (1,1) broadcast
    out_ref[...] = jax.nn.sigmoid(logits).reshape(1, 1, tb)


def init_params(key, discriminator_layer_size, input_size, class_num):
    """Logical (PyTorch-shaped, f32) parameters.

    nn.Linear weight (out, in) is kept transposed as (in, out); biases as (1, out).
    """
    h1, h2, h3 = discriminator_layer_size
    d_in = input_size + class_num
    ks = jax.random.split(key, 9)

    def lin_w(kw, fan_in, fan_out):
        bound = 1.0 / jnp.sqrt(fan_in)
        return jax.random.uniform(kw, (fan_in, fan_out), jnp.float32, -bound, bound)

    return {
        "label_emb": jax.random.normal(ks[0], (class_num, class_num), jnp.float32),
        "w1": lin_w(ks[1], d_in, h1),
        "b1": jax.random.uniform(ks[2], (1, h1), jnp.float32, -0.05, 0.05),
        "w2": lin_w(ks[3], h1, h2),
        "b2": jax.random.uniform(ks[4], (1, h2), jnp.float32, -0.05, 0.05),
        "w3": lin_w(ks[5], h2, h3),
        "b3": jax.random.uniform(ks[6], (1, h3), jnp.float32, -0.05, 0.05),
        "w4": lin_w(ks[7], h3, 1),
        "b4": jax.random.uniform(ks[8], (1, 1), jnp.float32, -0.05, 0.05),
    }


def prepare_params(params, input_size, class_num):
    """Kernel-ready params: split W1, fold emb@W1_c + b1 into ctab, pad to 128
    lanes, cast weights to bf16."""
    w1 = params["w1"]
    h1 = w1.shape[1]
    h2 = params["w2"].shape[1]
    h3 = params["w3"].shape[1]
    H1, H2, H3 = _round_up(h1, 128), _round_up(h2, 128), _round_up(h3, 128)
    CP = _round_up(class_num, 128)

    w1x = w1[:input_size]                 # (input_size, h1)
    w1c = w1[input_size:]                 # (class_num, h1)
    # One-hot rows sum to exactly 1 (labels in [0, class_num), padded batch
    # rows get label 0), so folding b1 here is exact up to the bf16 cast.
    ctab = params["label_emb"] @ w1c + params["b1"]       # (class_num, h1)

    def pad2(a, rows, cols):
        return jnp.pad(a, ((0, rows - a.shape[0]), (0, cols - a.shape[1])))

    return {
        "w1x": pad2(w1x, input_size, H1).astype(jnp.bfloat16),
        "ctab": pad2(ctab, CP, H1).astype(jnp.bfloat16),
        "w2": pad2(params["w2"], H1, H2).astype(jnp.bfloat16),
        "b2": pad2(params["b2"], 1, H2),
        "w3": pad2(params["w3"], H2, H3).astype(jnp.bfloat16),
        "b3": pad2(params["b3"], 1, H3),
        "w4": pad2(params["w4"].T, 1, H3).astype(jnp.bfloat16),   # (1, H3)
        "b4": params["b4"],                                        # (1, 1) f32
    }


@jax.jit
def discriminator_forward(x, labels, kp):
    """Mirrors Discriminator.forward: emb-lookup + concat + MLP + squeeze."""
    B, d_in = x.shape

    # Batch tile: multiple of 8 sublanes, capped at 1024 (resident weights are
    # ~100 KB; even at tile_b=1024 the double-buffered activation tiles are a
    # few MB — well under every generation's scoped VMEM default, so no
    # vmem_limit_bytes override is needed).  cdiv(B, 2) keeps >= 2 grid steps
    # whenever the batch allows it, so v7x's 2 TensorCores both get work.
    tile_b = min(1024, max(8, _round_up(pl.cdiv(B, 2), 8)))
    Bp = _round_up(B, tile_b)
    num_tiles = Bp // tile_b

    xw = x if Bp == B else jnp.pad(x, ((0, Bp - B), (0, 0)))
    lab = labels.astype(jnp.int32)
    lab = lab if Bp == B else jnp.pad(lab, ((0, Bp - B),))
    lab2 = lab.reshape(Bp, 1)

    def row_map(i):
        return (i, 0)

    def const_map(i):
        return (0, 0)

    out = pl.pallas_call(
        _disc_mlp_kernel,
        # Lane-dense output: one (1, tile_b) row per grid step.
        out_shape=jax.ShapeDtypeStruct((num_tiles, 1, tile_b), jnp.float32),
        grid=(num_tiles,),
        in_specs=[
            pl.BlockSpec((tile_b, d_in), row_map),          # x tile (streamed)
            pl.BlockSpec((tile_b, 1), row_map),             # labels tile (streamed)
            pl.BlockSpec(kp["w1x"].shape, const_map),       # resident weights below
            pl.BlockSpec(kp["ctab"].shape, const_map),
            pl.BlockSpec(kp["w2"].shape, const_map),
            pl.BlockSpec(kp["b2"].shape, const_map),
            pl.BlockSpec(kp["w3"].shape, const_map),
            pl.BlockSpec(kp["b3"].shape, const_map),
            pl.BlockSpec(kp["w4"].shape, const_map),
            pl.BlockSpec(kp["b4"].shape, const_map),
        ],
        out_specs=pl.BlockSpec((1, 1, tile_b), lambda i: (i, 0, 0)),
        compiler_params=pltpu.CompilerParams(
            dimension_semantics=("parallel",)),
    )(xw, lab2, kp["w1x"], kp["ctab"], kp["w2"], kp["b2"],
      kp["w3"], kp["b3"], kp["w4"], kp["b4"])

    return jnp.squeeze(out.reshape(Bp)[:B])     # matches torch out.squeeze()


def _reference_prepared(x, labels, kp):
    """Pure-JAX reference on the same prepared (bf16/padded) params."""
    onehot = jax.nn.one_hot(labels.astype(jnp.int32), kp["ctab"].shape[0],
                            dtype=jnp.bfloat16)
    h = (jnp.dot(x.astype(jnp.bfloat16), kp["w1x"],
                 preferred_element_type=jnp.float32)
         + jnp.dot(onehot, kp["ctab"], preferred_element_type=jnp.float32))
    h = _leaky_relu(h)
    h = jnp.dot(h.astype(jnp.bfloat16), kp["w2"],
                preferred_element_type=jnp.float32) + kp["b2"]
    h = _leaky_relu(h)
    h = jnp.dot(h.astype(jnp.bfloat16), kp["w3"],
                preferred_element_type=jnp.float32) + kp["b3"]
    h = _leaky_relu(h)
    logits = jnp.einsum('oh,bh->ob', kp["w4"], h.astype(jnp.bfloat16),
                        preferred_element_type=jnp.float32) + kp["b4"]
    return jnp.squeeze(jax.nn.sigmoid(logits)[0, :])


def _reference_logical(x, labels, params):
    """Pure f32 reference mirroring the PyTorch module (dropout = identity)."""
    c = jnp.take(params["label_emb"], labels, axis=0)
    h = jnp.concatenate([x, c], axis=1)
    h = _leaky_relu(h @ params["w1"] + params["b1"])
    h = _leaky_relu(h @ params["w2"] + params["b2"])
    h = _leaky_relu(h @ params["w3"] + params["b3"])
    return jnp.squeeze(jax.nn.sigmoid(h @ params["w4"] + params["b4"]))


if __name__ == "__main__":
    batch = 8
    input_size = 16
    class_num = 4
    discriminator_layer_size = [32, 32, 16]

    key = jax.random.PRNGKey(0)
    k_params, k_x, k_lbl = jax.random.split(key, 3)

    params = init_params(k_params, discriminator_layer_size, input_size, class_num)
    kernel_params = prepare_params(params, input_size, class_num)

    x = jax.random.normal(k_x, (batch, input_size), jnp.float32)
    labels = jax.random.randint(k_lbl, (batch,), 0, class_num, dtype=jnp.int32)

    out = discriminator_forward(x, labels, kernel_params)
    out = jax.block_until_ready(out)

    ref_same = _reference_prepared(x, labels, kernel_params)
    ref_f32 = _reference_logical(x, labels, params)

    assert out.shape == (batch,), out.shape
    assert jnp.allclose(out, ref_same, atol=1e-3, rtol=1e-3), (out, ref_same)
    assert jnp.allclose(out, ref_f32, atol=5e-2, rtol=5e-2), (out, ref_f32)

    print("KERNEL_OK")
</pallas_src>

<mosaic_0001>
module attributes {stable_mosaic.version = 11 : i64} {
  func.func @_disc_mlp_kernel(%arg0: i32, %arg1: memref<8x16xf32, #tpu.memory_space<vmem>>, %arg2: memref<8x1xi32, #tpu.memory_space<vmem>>, %arg3: memref<16x128xbf16, #tpu.memory_space<vmem>>, %arg4: memref<128x128xbf16, #tpu.memory_space<vmem>>, %arg5: memref<128x128xbf16, #tpu.memory_space<vmem>>, %arg6: memref<1x128xf32, #tpu.memory_space<vmem>>, %arg7: memref<128x128xbf16, #tpu.memory_space<vmem>>, %arg8: memref<1x128xf32, #tpu.memory_space<vmem>>, %arg9: memref<1x128xbf16, #tpu.memory_space<vmem>>, %arg10: memref<1x1xf32, #tpu.memory_space<vmem>>, %arg11: memref<1x1x8xf32, #tpu.memory_space<vmem>>) attributes {dimension_semantics = [#tpu.dimension_semantics<parallel>], iteration_bounds = array<i64: 1>, scalar_prefetch = 0 : i64, scratch_operands = 0 : i64, tpu.core_type = #tpu.core_type<tc>, window_params = [{transform_indices = @transform_0, window_bounds = array<i64: 8, 16>}, {transform_indices = @transform_1, window_bounds = array<i64: 8, 1>}, {pipeline_mode = #tpu.pipeline_mode<synchronous>, transform_indices = @transform_2, window_bounds = array<i64: 16, 128>}, {pipeline_mode = #tpu.pipeline_mode<synchronous>, transform_indices = @transform_3, window_bounds = array<i64: 128, 128>}, {pipeline_mode = #tpu.pipeline_mode<synchronous>, transform_indices = @transform_4, window_bounds = array<i64: 128, 128>}, {pipeline_mode = #tpu.pipeline_mode<synchronous>, transform_indices = @transform_5, window_bounds = array<i64: 1, 128>}, {pipeline_mode = #tpu.pipeline_mode<synchronous>, transform_indices = @transform_6, window_bounds = array<i64: 128, 128>}, {pipeline_mode = #tpu.pipeline_mode<synchronous>, transform_indices = @transform_7, window_bounds = array<i64: 1, 128>}, {pipeline_mode = #tpu.pipeline_mode<synchronous>, transform_indices = @transform_8, window_bounds = array<i64: 1, 128>}, {pipeline_mode = #tpu.pipeline_mode<synchronous>, transform_indices = @transform_9, window_bounds = array<i64: 1, 1>}, {transform_indices = @transform_10, window_bounds = array<i64: 1, 1, 8>}]} {
    %c0 = arith.constant 0 : index
    %c0_0 = arith.constant 0 : index
    %0 = vector.load %arg1[%c0, %c0_0] : memref<8x16xf32, #tpu.memory_space<vmem>>, vector<8x16xf32>
    %c0_1 = arith.constant 0 : index
    %c0_2 = arith.constant 0 : index
    %1 = vector.load %arg2[%c0_1, %c0_2] : memref<8x1xi32, #tpu.memory_space<vmem>>, vector<8x1xi32>
    %2 = tpu.iota {dimensions = array<i32: 1>} : vector<8x128xi32>
    %3 = vector.broadcast %1 : vector<8x1xi32> to vector<8x128xi32>
    %4 = arith.cmpi eq, %3, %2 : vector<8x128xi32>
    %5 = arith.extui %4 : vector<8x128xi1> to vector<8x128xi32>
    %6 = arith.sitofp %5 : vector<8x128xi32> to vector<8x128xf32>
    %7 = arith.truncf %6 : vector<8x128xf32> to vector<8x128xbf16>
    %8 = arith.truncf %0 : vector<8x16xf32> to vector<8x16xbf16>
    %c0_3 = arith.constant 0 : index
    %c0_4 = arith.constant 0 : index
    %9 = vector.load %arg3[%c0_3, %c0_4] : memref<16x128xbf16, #tpu.memory_space<vmem>>, vector<16x128xbf16>
    %cst = arith.constant dense<0.000000e+00> : vector<8x128xf32>
    %10 = tpu.matmul %8, %9, %cst {dimension_numbers = #tpu.dot_dimension_numbers<[1], [0], [0], [1], [0, 0, 1, 1], [], []>} : vector<8x16xbf16>, vector<16x128xbf16>, vector<8x128xf32> -> vector<8x128xf32>
    %c0_5 = arith.constant 0 : index
    %c0_6 = arith.constant 0 : index
    %11 = vector.load %arg4[%c0_5, %c0_6] : memref<128x128xbf16, #tpu.memory_space<vmem>>, vector<128x128xbf16>
    %cst_7 = arith.constant dense<0.000000e+00> : vector<8x128xf32>
    %12 = tpu.matmul %7, %11, %cst_7 {dimension_numbers = #tpu.dot_dimension_numbers<[1], [0], [0], [1], [0, 0, 1, 1], [], []>} : vector<8x128xbf16>, vector<128x128xbf16>, vector<8x128xf32> -> vector<8x128xf32>
    %13 = arith.addf %10, %12 : vector<8x128xf32>
    %cst_8 = arith.constant 0.000000e+00 : f32
    %14 = vector.broadcast %cst_8 : f32 to vector<8x128xf32>
    %15 = arith.cmpf oge, %13, %14 : vector<8x128xf32>
    %cst_9 = arith.constant 2.000000e-01 : f32
    %16 = vector.broadcast %cst_9 : f32 to vector<8x128xf32>
    %17 = arith.mulf %16, %13 : vector<8x128xf32>
    %18 = arith.select %15, %13, %17 : vector<8x128xi1>, vector<8x128xf32>
    %19 = arith.truncf %18 : vector<8x128xf32> to vector<8x128xbf16>
    %c0_10 = arith.constant 0 : index
    %c0_11 = arith.constant 0 : index
    %20 = vector.load %arg5[%c0_10, %c0_11] : memref<128x128xbf16, #tpu.memory_space<vmem>>, vector<128x128xbf16>
    %cst_12 = arith.constant dense<0.000000e+00> : vector<8x128xf32>
    %21 = tpu.matmul %19, %20, %cst_12 {dimension_numbers = #tpu.dot_dimension_numbers<[1], [0], [0], [1], [0, 0, 1, 1], [], []>} : vector<8x128xbf16>, vector<128x128xbf16>, vector<8x128xf32> -> vector<8x128xf32>
    %c0_13 = arith.constant 0 : index
    %c0_14 = arith.constant 0 : index
    %22 = vector.load %arg6[%c0_13, %c0_14] : memref<1x128xf32, #tpu.memory_space<vmem>>, vector<1x128xf32>
    %23 = vector.broadcast %22 : vector<1x128xf32> to vector<8x128xf32>
    %24 = arith.addf %21, %23 : vector<8x128xf32>
    %cst_15 = arith.constant 0.000000e+00 : f32
    %25 = vector.broadcast %cst_15 : f32 to vector<8x128xf32>
    %26 = arith.cmpf oge, %24, %25 : vector<8x128xf32>
    %cst_16 = arith.constant 2.000000e-01 : f32
    %27 = vector.broadcast %cst_16 : f32 to vector<8x128xf32>
    %28 = arith.mulf %27, %24 : vector<8x128xf32>
    %29 = arith.select %26, %24, %28 : vector<8x128xi1>, vector<8x128xf32>
    %30 = arith.truncf %29 : vector<8x128xf32> to vector<8x128xbf16>
    %c0_17 = arith.constant 0 : index
    %c0_18 = arith.constant 0 : index
    %31 = vector.load %arg7[%c0_17, %c0_18] : memref<128x128xbf16, #tpu.memory_space<vmem>>, vector<128x128xbf16>
    %cst_19 = arith.constant dense<0.000000e+00> : vector<8x128xf32>
    %32 = tpu.matmul %30, %31, %cst_19 {dimension_numbers = #tpu.dot_dimension_numbers<[1], [0], [0], [1], [0, 0, 1, 1], [], []>} : vector<8x128xbf16>, vector<128x128xbf16>, vector<8x128xf32> -> vector<8x128xf32>
    %c0_20 = arith.constant 0 : index
    %c0_21 = arith.constant 0 : index
    %33 = vector.load %arg8[%c0_20, %c0_21] : memref<1x128xf32, #tpu.memory_space<vmem>>, vector<1x128xf32>
    %34 = vector.broadcast %33 : vector<1x128xf32> to vector<8x128xf32>
    %35 = arith.addf %32, %34 : vector<8x128xf32>
    %cst_22 = arith.constant 0.000000e+00 : f32
    %36 = vector.broadcast %cst_22 : f32 to vector<8x128xf32>
    %37 = arith.cmpf oge, %35, %36 : vector<8x128xf32>
    %cst_23 = arith.constant 2.000000e-01 : f32
    %38 = vector.broadcast %cst_23 : f32 to vector<8x128xf32>
    %39 = arith.mulf %38, %35 : vector<8x128xf32>
    %40 = arith.select %37, %35, %39 : vector<8x128xi1>, vector<8x128xf32>
    %c0_24 = arith.constant 0 : index
    %c0_25 = arith.constant 0 : index
    %41 = vector.load %arg9[%c0_24, %c0_25] : memref<1x128xbf16, #tpu.memory_space<vmem>>, vector<1x128xbf16>
    %42 = arith.truncf %40 : vector<8x128xf32> to vector<8x128xbf16>
    "tpu.trace_start"() <{level = 10 : i32, message = "oh,bh->ob"}> : () -> ()
    %cst_26 = arith.constant dense<0.000000e+00> : vector<1x8xf32>
    %43 = tpu.matmul %41, %42, %cst_26 {dimension_numbers = #tpu.dot_dimension_numbers<[1], [1], [0], [0], [0, 0, 1, 0], [], []>} : vector<1x128xbf16>, vector<8x128xbf16>, vector<1x8xf32> -> vector<1x8xf32>
    "tpu.trace_stop"() : () -> ()
    %c0_27 = arith.constant 0 : index
    %c0_28 = arith.constant 0 : index
    %44 = vector.load %arg10[%c0_27, %c0_28] : memref<1x1xf32, #tpu.memory_space<vmem>>, vector<1x1xf32>
    %45 = vector.broadcast %44 : vector<1x1xf32> to vector<1x8xf32>
    %46 = arith.addf %43, %45 : vector<1x8xf32>
    %47 = arith.negf %46 : vector<1x8xf32>
    %48 = math.exp %47 : vector<1x8xf32>
    %cst_29 = arith.constant 1.000000e+00 : f32
    %49 = vector.broadcast %cst_29 : f32 to vector<1x8xf32>
    %50 = arith.addf %49, %48 : vector<1x8xf32>
    %51 = arith.divf %49, %50 : vector<1x8xf32>
    %52 = vector.shape_cast %51 : vector<1x8xf32> to vector<1x1x8xf32>
    %c0_30 = arith.constant 0 : index
    %c0_31 = arith.constant 0 : index
    %c0_32 = arith.constant 0 : index
    %53 = vector.load %arg11[%c0_30, %c0_31, %c0_32] : memref<1x1x8xf32, #tpu.memory_space<vmem>>, vector<1x1x8xf32>
    tpu.vector_store %arg11[%c0_30, %c0_31, %c0_32], %52 {strides = array<i32>} : memref<1x1x8xf32, #tpu.memory_space<vmem>>, vector<1x1x8xf32>,
    return
  }
  func.func @transform_0(%arg0: i32) -> (i32, i32) {
    %c0_i32 = arith.constant 0 : i32
    %c0_i32_0 = arith.constant 0 : i32
    return %arg0, %c0_i32 : i32, i32
  }
  func.func @transform_1(%arg0: i32) -> (i32, i32) {
    %c0_i32 = arith.constant 0 : i32
    %c0_i32_0 = arith.constant 0 : i32
    return %arg0, %c0_i32 : i32, i32
  }
  func.func @transform_2(%arg0: i32) -> (i32, i32) {
    %c0_i32 = arith.constant 0 : i32
    %c0_i32_0 = arith.constant 0 : i32
    %c0_i32_1 = arith.constant 0 : i32
    return %c0_i32, %c0_i32_0 : i32, i32
  }
  func.func @transform_3(%arg0: i32) -> (i32, i32) {
    %c0_i32 = arith.constant 0 : i32
    %c0_i32_0 = arith.constant 0 : i32
    %c0_i32_1 = arith.constant 0 : i32
    return %c0_i32, %c0_i32_0 : i32, i32
  }
  func.func @transform_4(%arg0: i32) -> (i32, i32) {
    %c0_i32 = arith.constant 0 : i32
    %c0_i32_0 = arith.constant 0 : i32
    %c0_i32_1 = arith.constant 0 : i32
    return %c0_i32, %c0_i32_0 : i32, i32
  }
  func.func @transform_5(%arg0: i32) -> (i32, i32) {
    %c0_i32 = arith.constant 0 : i32
    %c0_i32_0 = arith.constant 0 : i32
    %c0_i32_1 = arith.constant 0 : i32
    return %c0_i32, %c0_i32_0 : i32, i32
  }
  func.func @transform_6(%arg0: i32) -> (i32, i32) {
    %c0_i32 = arith.constant 0 : i32
    %c0_i32_0 = arith.constant 0 : i32
    %c0_i32_1 = arith.constant 0 : i32
    return %c0_i32, %c0_i32_0 : i32, i32
  }
  func.func @transform_7(%arg0: i32) -> (i32, i32) {
    %c0_i32 = arith.constant 0 : i32
    %c0_i32_0 = arith.constant 0 : i32
    %c0_i32_1 = arith.constant 0 : i32
    return %c0_i32, %c0_i32_0 : i32, i32
  }
  func.func @transform_8(%arg0: i32) -> (i32, i32) {
    %c0_i32 = arith.constant 0 : i32
    %c0_i32_0 = arith.constant 0 : i32
    %c0_i32_1 = arith.constant 0 : i32
    return %c0_i32, %c0_i32_0 : i32, i32
  }
  func.func @transform_9(%arg0: i32) -> (i32, i32) {
    %c0_i32 = arith.constant 0 : i32
    %c0_i32_0 = arith.constant 0 : i32
    %c0_i32_1 = arith.constant 0 : i32
    return %c0_i32, %c0_i32_0 : i32, i32
  }
  func.func @transform_10(%arg0: i32) -> (i32, i32, i32) {
    %c0_i32 = arith.constant 0 : i32
    %c0_i32_0 = arith.constant 0 : i32
    %c0_i32_1 = arith.constant 0 : i32
    return %arg0, %c0_i32, %c0_i32_0 : i32, i32, i32
  }
}

</mosaic_0001>

<bundles_post_ra>
// kernel: discriminator_forward.1
= control target key start
LH: loop header
LB: loop body
LE: loop exit
PB: predicated region body
PF: predicated region fallthrough
CT: control target
= control target key end

     0   :  { %s1018_s0 = inlined_call_operand.vmem [shape: f32[8,16], index: 0, kind: input, shape index: {}]   ;;  %s1019_s1 = inlined_call_operand.vmem [shape: s32[8,1], index: 1, kind: input, shape index: {}]   ;;  %s1020_s2 = inlined_call_operand.vmem [shape: bf16[16,128], index: 2, kind: input, shape index: {}]   ;;  %s1021_s3 = inlined_call_operand.hbm [shape: bf16[128,128], index: 3, kind: input, shape index: {}]   ;;  %s1022_s4 = inlined_call_operand.hbm [shape: bf16[128,128], index: 4, kind: input, shape index: {}]   ;;  %s1023_s5 = inlined_call_operand.vmem [shape: f32[1,128], index: 5, kind: input, shape index: {}]   ;;  %s1024_s6 = inlined_call_operand.hbm [shape: bf16[128,128], index: 6, kind: input, shape index: {}]   ;;  %s1025_s7 = inlined_call_operand.vmem [shape: f32[1,128], index: 7, kind: input, shape index: {}]   ;;  %s1026_s8 = inlined_call_operand.vmem [shape: bf16[1,128], index: 8, kind: input, shape index: {}]   ;;  %s1027_s9 = inlined_call_operand.<no memory space> [shape: f32[1,1], index: 9, kind: input, shape index: {}]   ;;  %s1028_s10 = inlined_call_operand.hbm [shape: f32[1,1,8], index: 10, kind: output, shape index: {}]  }
   0x1   :  { %v15_v0 = vstv %s1027_s9 }
   0x2   :  { %16 = vst [vmem:[#allocation2] sm:$0x1] %v15_v0 }
   0x3   :  { %17 = vsyncpa [#allocation4], 0 }
   0x4   :  { %18 = vsyncpa [#allocation7], 0 }
   0x5   :  { %19 = vsyncpa [#allocation5], 0  ;;  %s830_s15 = smov [#allocation6]   ;;  %s831_s17 = smov [#allocation3]  }
   0x6   :  { %s43_s16 = sshll.u32 %s830_s15, 4  ;;  %s31_s18 = sshll.u32 %s831_s17, 4  ;;  %s44_s16 = int_to_ptr.vmem [resolvable:$true] %s43_s16  ;;  %s898_s18 = int_to_ptr.vmem [resolvable:$true] %s31_s18 }
   0x7   :  { %s736_s21 = scalar_lea.hbm %s1022_s4, 1024 }
   0x8   :  { %p737_p0 = scmp.ne.s32.totalorder %s1022_s4, %s736_s21  ;;  %p740_p1 = scmp.lt.u32.totalorder %s736_s21, %s1022_s4 }
   0xa   :  { %p742_p2 = pnand %p740_p1, %p737_p0 }
   0xc   :  { %745 = shalt.err (!%p742_p2)
}
   0xd   :  { %s746_s25 = scalar_lea.vmem %s44_s16, 1024  ;;  %p751_p4 = scmp.lt.s32.totalorder %s44_s16, %s44_s16 }
   0xe   :  { %p747_p3 = scmp.ne.s32.totalorder %s44_s16, %s746_s25  ;;  %p752_p5 = scmp.lt.s32.totalorder %s746_s25, %s746_s25 }
  0x10   :  { %p753_p6 = por %p752_p5, %p751_p4 }
  0x12   :  { %p754_p7 = pnand %p753_p6, %p747_p3 }
  0x14   :  { %757 = shalt.err (!%p754_p7)
}
  0x15   :  { %s832_s26 = smov 64   ;;  %s833_s27 = smov 4  }
  0x16   :  { %49 = dma.hbm_to_vmem [thread:$0]  %s1022_s4, 1024, %s44_s16, [#allocation7], %s832_s26, %s832_s26, %s833_s27  }
  0x17   :  { %s758_s12 = scalar_lea.hbm %s1021_s3, 1024 }
  0x18   :  { %p759_p8 = scmp.ne.s32.totalorder %s1021_s3, %s758_s12  ;;  %p762_p9 = scmp.lt.u32.totalorder %s758_s12, %s1021_s3 }
  0x1a   :  { %p764_p10 = pnand %p762_p9, %p759_p8 }
  0x1c   :  { %767 = shalt.err (!%p764_p10)
}
  0x1d   :  { %s768_s19 = scalar_lea.vmem %s898_s18, 1024  ;;  %p773_p12 = scmp.lt.s32.totalorder %s898_s18, %s898_s18 }
  0x1e   :  { %p769_p11 = scmp.ne.s32.totalorder %s898_s18, %s768_s19  ;;  %p774_p13 = scmp.lt.s32.totalorder %s768_s19, %s768_s19 }
  0x20   :  { %p775_p0 = por %p774_p13, %p773_p12 }
  0x22   :  { %p776_p1 = pnand %p775_p0, %p769_p11 }
  0x24   :  { %779 = shalt.err (!%p776_p1)
}
  0x25   :  { %37 = dma.hbm_to_vmem [thread:$0]  %s1021_s3, 1024, %s898_s18, [#allocation4], %s832_s26, %s832_s26, %s833_s27  }
  0x26   :  { %s834_s20 = smov [#allocation8]   ;;  %s780_s9 = scalar_lea.hbm %s1024_s6, 1024 }
  0x27   :  { %s57_s21 = sshll.u32 %s834_s20, 4  ;;  %p781_p2 = scmp.ne.s32.totalorder %s1024_s6, %s780_s9  ;;  %s58_s21 = int_to_ptr.vmem [resolvable:$true] %s57_s21 }
  0x28   :  { %p784_p3 = scmp.lt.u32.totalorder %s780_s9, %s1024_s6 }
  0x2a   :  { %p786_p4 = pnand %p784_p3, %p781_p2 }
  0x2c   :  { %789 = shalt.err (!%p786_p4)
}
  0x2d   :  { %s790_s30 = scalar_lea.vmem %s58_s21, 1024  ;;  %p795_p6 = scmp.lt.s32.totalorder %s58_s21, %s58_s21 }
  0x2e   :  { %p791_p5 = scmp.ne.s32.totalorder %s58_s21, %s790_s30  ;;  %p796_p7 = scmp.lt.s32.totalorder %s790_s30, %s790_s30 }
  0x30   :  { %p797_p8 = por %p796_p7, %p795_p6 }
  0x32   :  { %p798_p9 = pnand %p797_p8, %p791_p5 }
  0x34   :  { %801 = shalt.err (!%p798_p9)
}
  0x35   :  { %63 = dma.hbm_to_vmem [thread:$0]  %s1024_s6, 1024, %s58_s21, [#allocation7], %s832_s26, %s832_s26, %s833_s27  }
  0x36   :  { %824 = dma.done.wait [#allocation4], 1024  }
  0x37   :  { %825 = vsyncadd [#allocation4], 4294966272 }
  0x38   :  { %826 = dma.done.wait [#allocation7], 2048  }
  0x39   :  { %827 = vsyncadd [#allocation7], 4294965248  ;;  %v835_v1 = vmov 0   ;;  %v836_v2 = vmov 0.0   ;;  %v81_v3 = vld [vmem:[%s1019_s1] sm:$0xff]  ;;  %vm837_vm0 = vmmov 0   ;;  %v82_v20 = vlaneseq }
  0x3a   :  { %706 = vset.pattern.permute.xlu0 %v835_v1  ;;  %620 = vmatprep.subr.bf16.mxu0 %v836_v2  ;;  %v707_v4 = vld [vmem:[#allocation3] sm:$0xff]   ;;  %v483_v5 = vld [vmem:[#allocation2] sm:$0x1]  ;;  %v708_v6 = vld [vmem:[#allocation3 + $0x8] sm:$0xff]   ;;  %v838_v24 = vmov 1.0|1.0  }
  0x3b   :  { %646 = vmatprep.subr.bf16.mxu1 %v836_v2  ;;  %85 = vperm.xlu0 %706, %v81_v3   ;;  %v709_v7 = vld [vmem:[#allocation3 + $0x10] sm:$0xff]   ;;  %v710_v8 = vld [vmem:[#allocation3 + $0x18] sm:$0xff]   ;;  %v711_v9 = vld [vmem:[#allocation3 + $0x20] sm:$0xff]   ;;  %v83_v21 = vand.u32 127, %v82_v20  ;;  %vm204_vm3 = vcmask 130048   ;;  %v490_v62 = vshrl.u32 %v82_v20, 7 }
  0x3c   :  { %636 = vmatprep.mubr.msk.bf16.mxu0 %vm837_vm0, %v836_v2  ;;  %662 = vmatprep.mubr.msk.bf16.mxu1 %vm837_vm0, %v836_v2  ;;  %v716_v10 = vld [vmem:[#allocation6] sm:$0xff]   ;;  %v712_v11 = vld [vmem:[#allocation3 + $0x28] sm:$0xff]   ;;  %v718_v13 = vld [vmem:[#allocation6 + $0x10] sm:$0xff]   ;;  %vm539_vm7 = vcmask 57344  }
  0x3d   :  { %621 = vmatpush3.bf16.msra.mxu0 %v707_v4  ;;  %647 = vmatpush3.bf16.msra.mxu1 %v716_v10  ;;  %v717_v12 = vld [vmem:[#allocation6 + $0x8] sm:$0xff]   ;;  %v713_v14 = vld [vmem:[#allocation3 + $0x30] sm:$0xff]   ;;  %v719_v15 = vld [vmem:[#allocation6 + $0x18] sm:$0xff]   ;;  %v491_v63 = vsub.s32 0, %v490_v62 }
  0x3e   :  { %622 = vmatprep.subr.bf16.mxu0 %v836_v2  ;;  %648 = vmatprep.subr.bf16.mxu1 %v836_v2  ;;  %v714_v16 = vld [vmem:[#allocation3 + $0x38] sm:$0xff]   ;;  %v720_v17 = vld [vmem:[#allocation6 + $0x20] sm:$0xff]   ;;  %v721_v18 = vld [vmem:[#allocation6 + $0x28] sm:$0xff]  }
  0x3f   :  { %486 = vperm.xlu0 %706, %v483_v5   ;;  %v722_v19 = vld [vmem:[#allocation6 + $0x30] sm:$0xff]   ;;  %v715_v23 = vld [vmem:[%s1020_s2] sm:$0xff]   ;;  %v725_v36 = vld [vmem:[#allocation8 + $0x8] sm:$0xff]  }
  0x40   :  { %v80_v25 = vld [vmem:[%s1018_s0] sm:$0xff]  ;;  %v726_v37 = vld [vmem:[#allocation8 + $0x10] sm:$0xff]   ;;  %v729_v40 = vld [vmem:[#allocation8 + $0x28] sm:$0xff]  }
  0x41   :  { %623 = vmatpush3.bf16.msra.mxu0 %v708_v6  ;;  %649 = vmatpush3.bf16.msra.mxu1 %v717_v12  ;;  %v91_v26 = vpack.c.bf16 %v80_v25, %v80_v25  ;;  %v723_v27 = vld [vmem:[#allocation6 + $0x38] sm:$0xff]   ;;  %v724_v34 = vld [vmem:[#allocation8] sm:$0xff]   ;;  %v730_v41 = vld [vmem:[#allocation8 + $0x30] sm:$0xff]  }
  0x42   :  { %624 = vmatprep.subr.bf16.mxu0 %v836_v2  ;;  %650 = vmatprep.subr.bf16.mxu1 %v836_v2  ;;  %v727_v38 = vld [vmem:[#allocation8 + $0x18] sm:$0xff]   ;;  %v728_v39 = vld [vmem:[#allocation8 + $0x20] sm:$0xff]  }
  0x43   :  { %v731_v42 = vld [vmem:[#allocation8 + $0x38] sm:$0xff]  }
  0x44   :  { %v570_v43 = vld [vmem:[%s1023_s5] ss:$0 sm:$0xff] }
  0x45   :  { %625 = vmatpush3.bf16.msra.mxu0 %v709_v7  ;;  %651 = vmatpush3.bf16.msra.mxu1 %v718_v13  ;;  %v579_v52 = vld [vmem:[%s1025_s7] ss:$0 sm:$0xff]  ;;  %s839_s7 = smov [#allocation9]  }
  0x46   :  { %626 = vmatprep.subr.bf16.mxu0 %v836_v2  ;;  %652 = vmatprep.subr.bf16.mxu1 %v836_v2  ;;  %v481_v61 = vld [vmem:[%s1026_s8] sm:$0x1]  ;;  %s547_s17 = sshll.u32 %s839_s7, 4  ;;  %s548_s17 = int_to_ptr.vmem [resolvable:$true] %s547_s17 }
  0x47   :  { %s802_s8 = scalar_lea.vmem %s548_s17, 16  ;;  %s806_s19 = scalar_lea.vmem %s548_s17, 32 }
  0x48   :  { %p803_p10 = scmp.ne.s32.totalorder %s548_s17, %s802_s8  ;;  %p807_p11 = scmp.lt.s32.totalorder %s548_s17, %s548_s17 }
  0x49   :  { %627 = vmatpush3.bf16.msra.mxu0 %v710_v8  ;;  %653 = vmatpush3.bf16.msra.mxu1 %v719_v15  ;;  %p808_p12 = scmp.lt.s32.totalorder %s806_s19, %s802_s8 }
  0x4a   :  { %628 = vmatprep.subr.bf16.mxu0 %v836_v2  ;;  %654 = vmatprep.subr.bf16.mxu1 %v836_v2 }
  0x4b   :  { %p809_p13 = por %p808_p12, %p807_p11 }
  0x4d   :  { %629 = vmatpush3.bf16.msra.mxu0 %v711_v9  ;;  %655 = vmatpush3.bf16.msra.mxu1 %v720_v17  ;;  %p810_p0 = pnand %p809_p13, %p803_p10 }
  0x4e   :  { %630 = vmatprep.subr.bf16.mxu0 %v836_v2  ;;  %656 = vmatprep.subr.bf16.mxu1 %v836_v2 }
  0x51   :  { %631 = vmatpush3.bf16.msra.mxu0 %v712_v11  ;;  %657 = vmatpush3.bf16.msra.mxu1 %v721_v18 }
  0x52   :  { %632 = vmatprep.subr.bf16.mxu0 %v836_v2  ;;  %658 = vmatprep.subr.bf16.mxu1 %v836_v2 }
  0x55   :  { %633 = vmatpush3.bf16.msra.mxu0 %v713_v14  ;;  %659 = vmatpush3.bf16.msra.mxu1 %v722_v19 }
  0x56   :  { %634 = vmatprep.subr.bf16.mxu0 %v836_v2  ;;  %660 = vmatprep.subr.bf16.mxu1 %v836_v2 }
  0x59   :  { %635 = vmatpush3.bf16.msra.mxu0 %v714_v16  ;;  %661 = vmatpush3.bf16.msra.mxu1 %v723_v27 }
  0x5a   :  { %640 = vmatprep.subr.bf16.mxu0 %v836_v2  ;;  %666 = vmatprep.subr.bf16.mxu1 %v836_v2 }
  0xba   :  { %v86_v22 = vpop.permute.xlu0 %85 }
  0xbb   :  { %vm87_vm1 = vcmp.eq.s32.totalorder %v86_v22, %v83_v21 }
  0xbc   :  { %vm566_vm2 = vmpackc.low %vm87_vm1, %vm87_vm1 }
  0xbd   :  { %637 = vmatmul.mubr.msk.bf16.vlgmr.msra.gmra.mrb[0].mxu0 %vm566_vm2, %v838_v24 }
  0xbe   :  { %641 = vmatpush3.bf16.msra.mxu0 %v715_v23  ;;  %642 = vmatprep.mubr.msk.bf16.mxu0 %vm837_vm0, %v836_v2  ;;  %v487_v0 = vpop.permute.xlu0 %486 }
  0xbf   :  { %686 = vmatprep.subr.bf16.mxu0 %v836_v2  ;;  %v492_v1 = vrot.slane %v487_v0, %v491_v63 }
  0xc9   :  { %643 = vmatmul.mubr.msk.bf16.vlgmr.msra.gmra.mrb[0].mxu0 %vm204_vm3, %v91_v26 }
  0xca   :  { %688 = vmatprep.mubr.msk.bf16.mxu0 %vm837_vm0, %v836_v2 }
 0x19c   :  { %v242_v28 = vpop.f32.mrb[0].mxu0 }
 0x19d   :  { %vm248_vm4 = vcmp.ge.f32.partialorder %v242_v28, 0.0  ;;  %v249_v29 = vmul.f32 0.2, %v242_v28  ;;  %v644_v30 = vpop.f32.mrb[1].mxu0 }
 0x19e   :  { %v245_v31 = vpop.f32.mrb[2].mxu0 }
 0x19f   :  { %v250_v32 = vsel %vm248_vm4, %v242_v28, %v249_v29  ;;  %v645_v33 = vpop.f32.mrb[3].mxu0 }
 0x1a0   :  { %v251_v35 = vpack.c.bf16 %v250_v32, %v250_v32 }
 0x1a2   :  { %663 = vmatmul.mubr.bf16.vlgmr.msra.gmra.mrb[0].mxu1 %v251_v35 }
 0x1a3   :  { %667 = vmatpush3.bf16.msra.mxu1 %v724_v34  ;;  %682 = vmatprep.mubr.msk.bf16.mxu1 %vm837_vm0, %v836_v2 }
 0x1a4   :  { %668 = vmatprep.subr.bf16.mxu1 %v836_v2 }
 0x1a7   :  { %669 = vmatpush3.bf16.msra.mxu1 %v725_v36 }
 0x1a8   :  { %670 = vmatprep.subr.bf16.mxu1 %v836_v2 }
 0x1ab   :  { %671 = vmatpush3.bf16.msra.mxu1 %v726_v37 }
 0x1ac   :  { %672 = vmatprep.subr.bf16.mxu1 %v836_v2 }
 0x1af   :  { %673 = vmatpush3.bf16.msra.mxu1 %v727_v38 }
 0x1b0   :  { %674 = vmatprep.subr.bf16.mxu1 %v836_v2 }
 0x1b3   :  { %675 = vmatpush3.bf16.msra.mxu1 %v728_v39 }
 0x1b4   :  { %676 = vmatprep.subr.bf16.mxu1 %v836_v2 }
 0x1b7   :  { %677 = vmatpush3.bf16.msra.mxu1 %v729_v40 }
 0x1b8   :  { %678 = vmatprep.subr.bf16.mxu1 %v836_v2 }
 0x1bb   :  { %679 = vmatpush3.bf16.msra.mxu1 %v730_v41 }
 0x1bc   :  { %680 = vmatprep.subr.bf16.mxu1 %v836_v2 }
 0x1bf   :  { %681 = vmatpush3.bf16.msra.mxu1 %v731_v42 }
 0x275   :  { %v357_v44 = vpop.f32.mrb[0].mxu1 }
 0x276   :  { %v358_v45 = vadd.f32 %v570_v43, %v357_v44  ;;  %v664_v46 = vpop.f32.mrb[1].mxu1 }
 0x277   :  { %v360_v47 = vpop.f32.mrb[2].mxu1 }
 0x278   :  { %vm363_vm5 = vcmp.ge.f32.partialorder %v358_v45, 0.0  ;;  %v364_v48 = vmul.f32 0.2, %v358_v45  ;;  %v665_v49 = vpop.f32.mrb[3].mxu1 }
 0x27a   :  { %v365_v50 = vsel %vm363_vm5, %v358_v45, %v364_v48 }
 0x27b   :  { %v366_v51 = vpack.c.bf16 %v365_v50, %v365_v50 }
 0x27d   :  { %683 = vmatmul.mubr.bf16.vlgmr.msra.gmra.mrb[4].mxu1 %v366_v51 }
 0x350   :  { %v472_v53 = vpop.f32.mrb[4].mxu1 }
 0x351   :  { %v473_v54 = vadd.f32 %v579_v52, %v472_v53  ;;  %v684_v55 = vpop.f32.mrb[5].mxu1 }
 0x352   :  { %v475_v56 = vpop.f32.mrb[6].mxu1 }
 0x353   :  { %vm478_vm6 = vcmp.ge.f32.partialorder %v473_v54, 0.0  ;;  %v479_v57 = vmul.f32 0.2, %v473_v54  ;;  %v685_v58 = vpop.f32.mrb[7].mxu1 }
 0x355   :  { %v480_v59 = vsel %vm478_vm6, %v473_v54, %v479_v57 }
 0x356   :  { %v482_v60 = vpack.c.bf16 %v480_v59, %v480_v59 }
 0x358   :  { %687 = vmatpush3.bf16.xpose.msra.mxu0 %v482_v60 }
 0x35f   :  { %689 = vmatmul.mubr.bf16.vlgmr.msra.gmra.mrb[4].mxu0 %v481_v61 }
 0x432   :  { %v527_v2 = vpop.f32.mrb[4].mxu0 }
 0x433   :  { %v528_v3 = vadd.f32 %v527_v2, %v492_v1  ;;  %v690_v4 = vpop.f32.mrb[5].mxu0 }
 0x434   :  { %v530_v5 = vpop.f32.mrb[6].mxu0 }
 0x435   :  { %v588_v6 = vmul.f32 -1.442695, %v528_v3  ;;  %v691_v7 = vpop.f32.mrb[7].mxu0 }
 0x437   :  { %732 = vpow2.f32 %v588_v6 }
 0x441   :  { %v733_v8 = vpop.eup %732 }
 0x442   :  { %v536_v9 = vadd.f32 1.0, %v733_v8 }
 0x444   :  { %734 = vrcp.f32 %v536_v9 }
 0x44e   :  { %v735_v10 = vpop.eup %734 }
 0x44f   :  { %540 = vst.msk [vmem:[#allocation9] sm:$0x1] %vm539_vm7, %v735_v10 }
 0x450   :  { %813 = shalt.err (!%p810_p0)
}
 0x451   :  { %s814_s20 = scalar_lea.hbm %s1028_s10, 16 }
 0x452   :  { %p815_p1 = scmp.ne.s32.totalorder %s1028_s10, %s814_s20  ;;  %p818_p2 = scmp.lt.u32.totalorder %s814_s20, %s1028_s10 }
 0x454   :  { %p820_p3 = pnand %p818_p2, %p815_p1 }
 0x456   :  { %823 = shalt.err (!%p820_p3)
}
 0x457   :  { %550 = dma.vmem_to_hbm [thread:$0]  %s548_s17, 16, %s1028_s10, [#allocation5]  }
 0x458   :  { %828 = dma.done.wait [#allocation5], 16  }
 0x459   :  { %829 = vsyncadd [#allocation5], 4294967280 }
 0x45a   :  { %554 = vsyncpa [#allocation4], 1 }
 0x45b   :  { %555 = vsyncpa [#allocation7], 1 }
 0x45c   :  { %556 = vsyncpa [#allocation5], 1 }

</bundles_post_ra>
